<compile_context>
chip_gen: v7x
topology: tpu7x:2x2x1
jax: 0.10.0
libtpu: 0.0.40
codegen_flags: <defaults>
</compile_context>

<pallas_src>
import jax
import jax.numpy as jnp
from jax.experimental import pallas as pl
from jax.experimental.pallas import tpu as pltpu

# ---------------------------------------------------------------------------
# Color constants (standard sRGB / CIE definitions).
# ---------------------------------------------------------------------------
_DELTA = 6.0 / 29.0                 # CIELAB knee (reference path only)
_D65 = (0.95047, 1.0, 1.08883)      # reference white used by CIELABToCIEXYZ()

# sRGB (linear) -> CIEXYZ  (D65)
_M_RGB2XYZ = (
    (0.4124564, 0.3575761, 0.1804375),
    (0.2126729, 0.7151522, 0.0721750),
    (0.0193339, 0.1191920, 0.9503041),
)
# CIEXYZ -> sRGB (linear)
_M_XYZ2RGB = (
    ( 3.2404542, -1.5371385, -0.4985314),
    (-0.9692660,  1.8760108,  0.0415560),
    ( 0.0556434, -0.2040259,  1.0572252),
)

# Folded branch thresholds / constants:
#   c = (x+1)/2;  EOTF linear:  c/12.92        -> (x+1)/25.84
#                 EOTF pow:     ((c+.055)/1.055)^2.4 -> ((x+1.11)/2.11)^2.4
#                 threshold:    c <= 0.04045   -> x <= 2*0.04045 - 1
#   out = 2*srgb - 1;  OETF linear: 12.92*m    -> 25.84*m - 1
#                      OETF pow: 1.055*y-.055  -> 2.11*y - 1.11
_INV_THRESH = 2.0 * 0.04045 - 1.0        # -0.9191
_OETF_THRESH = 0.0031308


# ---------------------------------------------------------------------------
# Pallas kernel.  Works for both layouts:
#   dense path   : block (3, R, 128)   (channel axis leading, NOT tiled)
#   fallback path: block (3, T)
# TODO(synk): torchvision_to_unit_interval assumed to be (x + 1) / 2.
# ---------------------------------------------------------------------------
def _cielab_adapt_kernel(x_ref, m_ref, o_ref):
    x = x_ref[...].astype(jnp.float32)

    # torchvision[-1,1] -> unit -> sRGB inverse gamma (folded constants).
    # Clamp the pow base to >= 0 so out-of-range / stale ragged-tile lanes
    # never feed a negative base into pow (unselected-branch safety).
    lin = jnp.where(
        x <= _INV_THRESH,
        x * (1.0 / 25.84) + (1.0 / 25.84),
        (jnp.maximum(x + 1.11, 0.0) * (1.0 / 2.11)) ** 2.4,
    )

    # Per-channel slabs (leading axis -> dense (R,128) tiles in the 4D path).
    r = lin[0:1]
    g = lin[1:2]
    b = lin[2:3]

    def _out_channel(i):
        # Fused 3x3 mix:  M_XYZ2RGB @ diag(D65 / xyz_n) @ M_RGB2XYZ  (SMEM scalars)
        m = m_ref[i, 0] * r + m_ref[i, 1] * g + m_ref[i, 2] * b
        # sRGB gamma (OETF) + unit -> torchvision, constants folded.
        y = jnp.maximum(m, 0.0) ** (1.0 / 2.4)
        res = jnp.where(m <= _OETF_THRESH, 25.84 * m - 1.0, 2.11 * y - 1.11)
        return res.astype(o_ref.dtype)

    # Per-channel dense stores -- no concatenate / sublane relayout.
    o_ref[0:1] = _out_channel(0)
    o_ref[1:2] = _out_channel(1)
    o_ref[2:3] = _out_channel(2)


# ---------------------------------------------------------------------------
# Wrapper: NCHW in / NCHW out, no transposes, no pads, no wrapper-side casts.
# ---------------------------------------------------------------------------
def _fused_matrix(xyz_n):
    """M_XYZ2RGB @ diag(D65 / xyz_n) @ M_RGB2XYZ, computed once per call."""
    xyz_n = jnp.asarray(xyz_n, jnp.float32).reshape(3)
    scale = jnp.asarray(_D65, jnp.float32) / xyz_n                 # (3,)
    m_rgb2xyz = jnp.asarray(_M_RGB2XYZ, jnp.float32)               # (3, 3)
    m_xyz2rgb = jnp.asarray(_M_XYZ2RGB, jnp.float32)               # (3, 3)
    return m_xyz2rgb @ (scale[:, None] * m_rgb2xyz)                # (3, 3)


def cielab_adaptation(im, xyz_n, *, tile_pixels=262144):
    """im: (N, 3, H, W), torchvision range.  xyz_n: (3,) white point."""
    N, C, H, W = im.shape
    assert C == 3, "expected 3 color channels"
    HW = H * W
    dtype = im.dtype
    m = _fused_matrix(xyz_n)

    if HW % 128 == 0:
        # ------ dense layout: (N, 3, HW//128, 128), channel axis untiled ----
        rows = HW // 128
        x = im.reshape(N, 3, rows, 128)                # free reshape, no cast
        r = min(max(tile_pixels // 128, 1), rows)
        if N == 1 and rows >= 16:
            # feed both v7x TensorCores on single-image calls
            r = min(r, -(-rows // 2))
        if r < rows:
            r = max(8, (r // 8) * 8)                   # (8,128)-aligned block
            if r >= rows:
                r = rows
        grid = (N, pl.cdiv(rows, r))
        block = (None, 3, r, 128)
        imap = lambda n, i: (n, 0, i, 0)
        out_shape = jax.ShapeDtypeStruct((N, 3, rows, 128), dtype)
        block_pixels = r * 128
    else:
        # ------ fallback layout: (N, 3, HW), channel axis on sublanes -------
        x = im.reshape(N, 3, HW)
        t = min(tile_pixels, HW)
        if t < HW:
            t = max(128, (t // 128) * 128)
        grid = (N, pl.cdiv(HW, t))
        block = (None, 3, t)
        imap = lambda n, i: (n, 0, i)
        out_shape = jax.ShapeDtypeStruct((N, 3, HW), dtype)
        block_pixels = t

    total_elems = N * 3 * HW
    itemsize = jnp.dtype(dtype).itemsize
    cost = pl.CostEstimate(
        flops=30 * total_elems,
        transcendentals=2 * total_elems,            # one pow in, one pow out
        bytes_accessed=2 * total_elems * itemsize,  # read + write, native dtype
    )

    out = pl.pallas_call(
        _cielab_adapt_kernel,
        out_shape=out_shape,
        grid=grid,
        in_specs=[
            pl.BlockSpec(block, imap),
            # fused 3x3 matrix as SMEM scalars (whole array, untiled).
            pl.BlockSpec(memory_space=pltpu.MemorySpace.SMEM),
        ],
        out_specs=pl.BlockSpec(block, imap),
        compiler_params=pltpu.CompilerParams(
            dimension_semantics=("parallel", "parallel"),
            # 256K-pixel f32 blocks = ~12 MiB double-buffered in+out; fits all
            # of v5e/v6e/v7x with this explicit scoped limit.
            vmem_limit_bytes=32 * 1024 * 1024,
        ),
        cost_estimate=cost,
    )(x, m)

    del block_pixels  # (kept for clarity; tile already VMEM-safe)
    return out.reshape(N, 3, H, W)


# ---------------------------------------------------------------------------
# Pure-JAX reference: the FULL original pipeline (including the explicit
# CIELAB round trip) to validate the algebraic collapse in the kernel.
# ---------------------------------------------------------------------------
def _srgb_inv_gamma(c):
    return jnp.where(c <= 0.04045, c / 12.92, ((c + 0.055) / 1.055) ** 2.4)


def _srgb_gamma(c):
    return jnp.where(c <= 0.0031308, 12.92 * c, 1.055 * (c ** (1.0 / 2.4)) - 0.055)


def _lab_f(t):
    return jnp.where(t > _DELTA ** 3, jnp.cbrt(t), t / (3.0 * _DELTA ** 2) + 4.0 / 29.0)


def _lab_f_inv(t):
    return jnp.where(t > _DELTA, t * t * t, 3.0 * _DELTA ** 2 * (t - 4.0 / 29.0))


def _reference(im, xyz_n):
    x = (im.astype(jnp.float32) + 1.0) * 0.5
    r, g, b = x[:, 0], x[:, 1], x[:, 2]
    rl, gl, bl = _srgb_inv_gamma(r), _srgb_inv_gamma(g), _srgb_inv_gamma(b)
    m = _M_RGB2XYZ
    X = m[0][0] * rl + m[0][1] * gl + m[0][2] * bl
    Y = m[1][0] * rl + m[1][1] * gl + m[1][2] * bl
    Z = m[2][0] * rl + m[2][1] * gl + m[2][2] * bl
    fx, fy, fz = _lab_f(X / xyz_n[0]), _lab_f(Y / xyz_n[1]), _lab_f(Z / xyz_n[2])
    L, a, bb = 116.0 * fy - 16.0, 500.0 * (fx - fy), 200.0 * (fy - fz)
    fy2 = (L + 16.0) / 116.0
    fx2, fz2 = fy2 + a / 500.0, fy2 - bb / 200.0
    X2 = _D65[0] * _lab_f_inv(fx2)
    Y2 = _D65[1] * _lab_f_inv(fy2)
    Z2 = _D65[2] * _lab_f_inv(fz2)
    mi = _M_XYZ2RGB
    r2 = mi[0][0] * X2 + mi[0][1] * Y2 + mi[0][2] * Z2
    g2 = mi[1][0] * X2 + mi[1][1] * Y2 + mi[1][2] * Z2
    b2 = mi[2][0] * X2 + mi[2][1] * Y2 + mi[2][2] * Z2
    out = jnp.stack([_srgb_gamma(r2), _srgb_gamma(g2), _srgb_gamma(b2)], axis=1)
    return out * 2.0 - 1.0


if __name__ == "__main__":
    key = jax.random.PRNGKey(0)
    # torchvision-style image in [-1, 1], NCHW, small shape (HW = 256, 128-aligned)
    im = jax.random.uniform(key, (2, 3, 16, 16), jnp.float32, minval=-1.0, maxval=1.0)
    # deterministic __init__ parameter: D50 white point (differs from D65 reverse)
    xyz_n = jnp.array([0.96422, 1.0, 0.82521], dtype=jnp.float32)

    out = jax.block_until_ready(cielab_adaptation(im, xyz_n))

    ref = _reference(im, xyz_n)
    assert out.shape == im.shape and out.dtype == im.dtype
    err = float(jnp.max(jnp.abs(out - ref)))
    assert err < 1e-4, f"mismatch vs reference: {err}"

    # also exercise the non-128-aligned fallback path (HW = 15*13 = 195)
    im2 = jax.random.uniform(jax.random.PRNGKey(1), (1, 3, 15, 13), jnp.float32,
                             minval=-1.0, maxval=1.0)
    out2 = jax.block_until_ready(cielab_adaptation(im2, xyz_n))
    err2 = float(jnp.max(jnp.abs(out2 - _reference(im2, xyz_n))))
    assert err2 < 1e-4, f"fallback mismatch vs reference: {err2}"

    print("KERNEL_OK")
</pallas_src>

<mosaic_0001>
module attributes {stable_mosaic.version = 11 : i64} {
  func.func @_cielab_adapt_kernel(%arg0: i32, %arg1: i32, %arg2: memref<1x3x2x128xf32, #tpu.memory_space<vmem>>, %arg3: memref<3x3xf32, #tpu.memory_space<smem>>, %arg4: memref<1x3x2x128xf32, #tpu.memory_space<vmem>>) attributes {dimension_semantics = [#tpu.dimension_semantics<parallel>, #tpu.dimension_semantics<parallel>], iteration_bounds = array<i64: 2, 1>, scalar_prefetch = 0 : i64, scratch_operands = 0 : i64, tpu.core_type = #tpu.core_type<tc>, window_params = [{transform_indices = @transform_0, window_bounds = array<i64: 1, 3, 2, 128>}, {transform_indices = @transform_1, window_bounds = array<i64: 3, 3>}, {transform_indices = @transform_2, window_bounds = array<i64: 1, 3, 2, 128>}]} {
    %c0 = arith.constant 0 : index
    %c0_0 = arith.constant 0 : index
    %c0_1 = arith.constant 0 : index
    %c0_2 = arith.constant 0 : index
    %0 = vector.load %arg2[%c0, %c0_0, %c0_1, %c0_2] : memref<1x3x2x128xf32, #tpu.memory_space<vmem>>, vector<1x3x2x128xf32>
    %1 = vector.shape_cast %0 : vector<1x3x2x128xf32> to vector<3x2x128xf32>
    %cst = arith.constant -0.919099986 : f32
    %2 = vector.broadcast %cst : f32 to vector<3x2x128xf32>
    %3 = arith.cmpf ole, %1, %2 : vector<3x2x128xf32>
    %cst_3 = arith.constant 0.0386996903 : f32
    %4 = vector.broadcast %cst_3 : f32 to vector<3x2x128xf32>
    %5 = arith.mulf %1, %4 : vector<3x2x128xf32>
    %cst_4 = arith.constant 0.0386996903 : f32
    %6 = vector.broadcast %cst_4 : f32 to vector<3x2x128xf32>
    %7 = arith.addf %5, %6 : vector<3x2x128xf32>
    %cst_5 = arith.constant 1.110000e+00 : f32
    %8 = vector.broadcast %cst_5 : f32 to vector<3x2x128xf32>
    %9 = arith.addf %1, %8 : vector<3x2x128xf32>
    %cst_6 = arith.constant 0.000000e+00 : f32
    %10 = vector.broadcast %cst_6 : f32 to vector<3x2x128xf32>
    %11 = arith.maximumf %9, %10 : vector<3x2x128xf32>
    %cst_7 = arith.constant 0.473933637 : f32
    %12 = vector.broadcast %cst_7 : f32 to vector<3x2x128xf32>
    %13 = arith.mulf %11, %12 : vector<3x2x128xf32>
    %cst_8 = arith.constant 2.400000e+00 : f32
    %14 = vector.broadcast %cst_8 : f32 to vector<3x2x128xf32>
    %15 = math.powf %13, %14 : vector<3x2x128xf32>
    %16 = arith.select %3, %7, %15 : vector<3x2x128xi1>, vector<3x2x128xf32>
    %17 = vector.extract_strided_slice %16 {offsets = [0, 0, 0], sizes = [1, 2, 128], strides = [1, 1, 1]} : vector<3x2x128xf32> to vector<1x2x128xf32>
    %18 = vector.extract_strided_slice %16 {offsets = [1, 0, 0], sizes = [1, 2, 128], strides = [1, 1, 1]} : vector<3x2x128xf32> to vector<1x2x128xf32>
    %19 = vector.extract_strided_slice %16 {offsets = [2, 0, 0], sizes = [1, 2, 128], strides = [1, 1, 1]} : vector<3x2x128xf32> to vector<1x2x128xf32>
    %c0_9 = arith.constant 0 : index
    %c0_10 = arith.constant 0 : index
    %20 = memref.load %arg3[%c0_9, %c0_10] : memref<3x3xf32, #tpu.memory_space<smem>>
    %21 = vector.broadcast %20 : f32 to vector<1x2x128xf32>
    %22 = arith.mulf %21, %17 : vector<1x2x128xf32>
    %c0_11 = arith.constant 0 : index
    %c1 = arith.constant 1 : index
    %23 = memref.load %arg3[%c0_11, %c1] : memref<3x3xf32, #tpu.memory_space<smem>>
    %24 = vector.broadcast %23 : f32 to vector<1x2x128xf32>
    %25 = arith.mulf %24, %18 : vector<1x2x128xf32>
    %26 = arith.addf %22, %25 : vector<1x2x128xf32>
    %c0_12 = arith.constant 0 : index
    %c2 = arith.constant 2 : index
    %27 = memref.load %arg3[%c0_12, %c2] : memref<3x3xf32, #tpu.memory_space<smem>>
    %28 = vector.broadcast %27 : f32 to vector<1x2x128xf32>
    %29 = arith.mulf %28, %19 : vector<1x2x128xf32>
    %30 = arith.addf %26, %29 : vector<1x2x128xf32>
    %cst_13 = arith.constant 0.000000e+00 : f32
    %31 = vector.broadcast %cst_13 : f32 to vector<1x2x128xf32>
    %32 = arith.maximumf %30, %31 : vector<1x2x128xf32>
    %cst_14 = arith.constant 0.416666657 : f32
    %33 = vector.broadcast %cst_14 : f32 to vector<1x2x128xf32>
    %34 = math.powf %32, %33 : vector<1x2x128xf32>
    %cst_15 = arith.constant 3.130800e-03 : f32
    %35 = vector.broadcast %cst_15 : f32 to vector<1x2x128xf32>
    %36 = arith.cmpf ole, %30, %35 : vector<1x2x128xf32>
    %cst_16 = arith.constant 2.584000e+01 : f32
    %37 = vector.broadcast %cst_16 : f32 to vector<1x2x128xf32>
    %38 = arith.mulf %37, %30 : vector<1x2x128xf32>
    %cst_17 = arith.constant 1.000000e+00 : f32
    %39 = vector.broadcast %cst_17 : f32 to vector<1x2x128xf32>
    %40 = arith.subf %38, %39 : vector<1x2x128xf32>
    %cst_18 = arith.constant 2.110000e+00 : f32
    %41 = vector.broadcast %cst_18 : f32 to vector<1x2x128xf32>
    %42 = arith.mulf %41, %34 : vector<1x2x128xf32>
    %cst_19 = arith.constant 1.110000e+00 : f32
    %43 = vector.broadcast %cst_19 : f32 to vector<1x2x128xf32>
    %44 = arith.subf %42, %43 : vector<1x2x128xf32>
    %45 = arith.select %36, %40, %44 : vector<1x2x128xi1>, vector<1x2x128xf32>
    %c0_20 = arith.constant 0 : index
    %c0_21 = arith.constant 0 : index
    %c0_22 = arith.constant 0 : index
    %c0_23 = arith.constant 0 : index
    %46 = vector.load %arg4[%c0_20, %c0_21, %c0_22, %c0_23] : memref<1x3x2x128xf32, #tpu.memory_space<vmem>>, vector<1x1x2x128xf32>
    %47 = vector.shape_cast %46 : vector<1x1x2x128xf32> to vector<1x2x128xf32>
    %48 = vector.shape_cast %45 : vector<1x2x128xf32> to vector<1x1x2x128xf32>
    tpu.vector_store %arg4[%c0_20, %c0_21, %c0_22, %c0_23], %48 {strides = array<i32>} : memref<1x3x2x128xf32, #tpu.memory_space<vmem>>, vector<1x1x2x128xf32>,
    %c1_24 = arith.constant 1 : index
    %c0_25 = arith.constant 0 : index
    %49 = memref.load %arg3[%c1_24, %c0_25] : memref<3x3xf32, #tpu.memory_space<smem>>
    %50 = vector.broadcast %49 : f32 to vector<1x2x128xf32>
    %51 = arith.mulf %50, %17 : vector<1x2x128xf32>
    %c1_26 = arith.constant 1 : index
    %c1_27 = arith.constant 1 : index
    %52 = memref.load %arg3[%c1_26, %c1_27] : memref<3x3xf32, #tpu.memory_space<smem>>
    %53 = vector.broadcast %52 : f32 to vector<1x2x128xf32>
    %54 = arith.mulf %53, %18 : vector<1x2x128xf32>
    %55 = arith.addf %51, %54 : vector<1x2x128xf32>
    %c1_28 = arith.constant 1 : index
    %c2_29 = arith.constant 2 : index
    %56 = memref.load %arg3[%c1_28, %c2_29] : memref<3x3xf32, #tpu.memory_space<smem>>
    %57 = vector.broadcast %56 : f32 to vector<1x2x128xf32>
    %58 = arith.mulf %57, %19 : vector<1x2x128xf32>
    %59 = arith.addf %55, %58 : vector<1x2x128xf32>
    %cst_30 = arith.constant 0.000000e+00 : f32
    %60 = vector.broadcast %cst_30 : f32 to vector<1x2x128xf32>
    %61 = arith.maximumf %59, %60 : vector<1x2x128xf32>
    %cst_31 = arith.constant 0.416666657 : f32
    %62 = vector.broadcast %cst_31 : f32 to vector<1x2x128xf32>
    %63 = math.powf %61, %62 : vector<1x2x128xf32>
    %cst_32 = arith.constant 3.130800e-03 : f32
    %64 = vector.broadcast %cst_32 : f32 to vector<1x2x128xf32>
    %65 = arith.cmpf ole, %59, %64 : vector<1x2x128xf32>
    %cst_33 = arith.constant 2.584000e+01 : f32
    %66 = vector.broadcast %cst_33 : f32 to vector<1x2x128xf32>
    %67 = arith.mulf %66, %59 : vector<1x2x128xf32>
    %cst_34 = arith.constant 1.000000e+00 : f32
    %68 = vector.broadcast %cst_34 : f32 to vector<1x2x128xf32>
    %69 = arith.subf %67, %68 : vector<1x2x128xf32>
    %cst_35 = arith.constant 2.110000e+00 : f32
    %70 = vector.broadcast %cst_35 : f32 to vector<1x2x128xf32>
    %71 = arith.mulf %70, %63 : vector<1x2x128xf32>
    %cst_36 = arith.constant 1.110000e+00 : f32
    %72 = vector.broadcast %cst_36 : f32 to vector<1x2x128xf32>
    %73 = arith.subf %71, %72 : vector<1x2x128xf32>
    %74 = arith.select %65, %69, %73 : vector<1x2x128xi1>, vector<1x2x128xf32>
    %c0_37 = arith.constant 0 : index
    %c1_38 = arith.constant 1 : index
    %c0_39 = arith.constant 0 : index
    %c0_40 = arith.constant 0 : index
    %75 = vector.load %arg4[%c0_37, %c1_38, %c0_39, %c0_40] : memref<1x3x2x128xf32, #tpu.memory_space<vmem>>, vector<1x1x2x128xf32>
    %76 = vector.shape_cast %75 : vector<1x1x2x128xf32> to vector<1x2x128xf32>
    %77 = vector.shape_cast %74 : vector<1x2x128xf32> to vector<1x1x2x128xf32>
    tpu.vector_store %arg4[%c0_37, %c1_38, %c0_39, %c0_40], %77 {strides = array<i32>} : memref<1x3x2x128xf32, #tpu.memory_space<vmem>>, vector<1x1x2x128xf32>,
    %c2_41 = arith.constant 2 : index
    %c0_42 = arith.constant 0 : index
    %78 = memref.load %arg3[%c2_41, %c0_42] : memref<3x3xf32, #tpu.memory_space<smem>>
    %79 = vector.broadcast %78 : f32 to vector<1x2x128xf32>
    %80 = arith.mulf %79, %17 : vector<1x2x128xf32>
    %c2_43 = arith.constant 2 : index
    %c1_44 = arith.constant 1 : index
    %81 = memref.load %arg3[%c2_43, %c1_44] : memref<3x3xf32, #tpu.memory_space<smem>>
    %82 = vector.broadcast %81 : f32 to vector<1x2x128xf32>
    %83 = arith.mulf %82, %18 : vector<1x2x128xf32>
    %84 = arith.addf %80, %83 : vector<1x2x128xf32>
    %c2_45 = arith.constant 2 : index
    %c2_46 = arith.constant 2 : index
    %85 = memref.load %arg3[%c2_45, %c2_46] : memref<3x3xf32, #tpu.memory_space<smem>>
    %86 = vector.broadcast %85 : f32 to vector<1x2x128xf32>
    %87 = arith.mulf %86, %19 : vector<1x2x128xf32>
    %88 = arith.addf %84, %87 : vector<1x2x128xf32>
    %cst_47 = arith.constant 0.000000e+00 : f32
    %89 = vector.broadcast %cst_47 : f32 to vector<1x2x128xf32>
    %90 = arith.maximumf %88, %89 : vector<1x2x128xf32>
    %cst_48 = arith.constant 0.416666657 : f32
    %91 = vector.broadcast %cst_48 : f32 to vector<1x2x128xf32>
    %92 = math.powf %90, %91 : vector<1x2x128xf32>
    %cst_49 = arith.constant 3.130800e-03 : f32
    %93 = vector.broadcast %cst_49 : f32 to vector<1x2x128xf32>
    %94 = arith.cmpf ole, %88, %93 : vector<1x2x128xf32>
    %cst_50 = arith.constant 2.584000e+01 : f32
    %95 = vector.broadcast %cst_50 : f32 to vector<1x2x128xf32>
    %96 = arith.mulf %95, %88 : vector<1x2x128xf32>
    %cst_51 = arith.constant 1.000000e+00 : f32
    %97 = vector.broadcast %cst_51 : f32 to vector<1x2x128xf32>
    %98 = arith.subf %96, %97 : vector<1x2x128xf32>
    %cst_52 = arith.constant 2.110000e+00 : f32
    %99 = vector.broadcast %cst_52 : f32 to vector<1x2x128xf32>
    %100 = arith.mulf %99, %92 : vector<1x2x128xf32>
    %cst_53 = arith.constant 1.110000e+00 : f32
    %101 = vector.broadcast %cst_53 : f32 to vector<1x2x128xf32>
    %102 = arith.subf %100, %101 : vector<1x2x128xf32>
    %103 = arith.select %94, %98, %102 : vector<1x2x128xi1>, vector<1x2x128xf32>
    %c0_54 = arith.constant 0 : index
    %c2_55 = arith.constant 2 : index
    %c0_56 = arith.constant 0 : index
    %c0_57 = arith.constant 0 : index
    %104 = vector.load %arg4[%c0_54, %c2_55, %c0_56, %c0_57] : memref<1x3x2x128xf32, #tpu.memory_space<vmem>>, vector<1x1x2x128xf32>
    %105 = vector.shape_cast %104 : vector<1x1x2x128xf32> to vector<1x2x128xf32>
    %106 = vector.shape_cast %103 : vector<1x2x128xf32> to vector<1x1x2x128xf32>
    tpu.vector_store %arg4[%c0_54, %c2_55, %c0_56, %c0_57], %106 {strides = array<i32>} : memref<1x3x2x128xf32, #tpu.memory_space<vmem>>, vector<1x1x2x128xf32>,
    return
  }
  func.func @transform_0(%arg0: i32, %arg1: i32) -> (i32, i32, i32, i32) {
    %c0_i32 = arith.constant 0 : i32
    %c0_i32_0 = arith.constant 0 : i32
    %c0_i32_1 = arith.constant 0 : i32
    return %arg0, %c0_i32, %arg1, %c0_i32_0 : i32, i32, i32, i32
  }
  func.func @transform_1(%arg0: i32, %arg1: i32) -> (i32, i32) {
    %c0_i32 = arith.constant 0 : i32
    %c0_i32_0 = arith.constant 0 : i32
    %c0_i32_1 = arith.constant 0 : i32
    return %c0_i32, %c0_i32_0 : i32, i32
  }
  func.func @transform_2(%arg0: i32, %arg1: i32) -> (i32, i32, i32, i32) {
    %c0_i32 = arith.constant 0 : i32
    %c0_i32_0 = arith.constant 0 : i32
    %c0_i32_1 = arith.constant 0 : i32
    return %arg0, %c0_i32, %arg1, %c0_i32_0 : i32, i32, i32, i32
  }
}

</mosaic_0001>

<bundles_post_ra>
// kernel: tpu_custom_call.1
= control target key start
LH: loop header
LB: loop body
LE: loop exit
PB: predicated region body
PF: predicated region fallthrough
CT: control target
= control target key end

     0   :  { %7 = vsyncpa [#allocation3], 0  ;;  %s1190_s0 = inlined_call_operand.hbm [shape: f32[2,3,2,128], index: 0, kind: input, shape index: {}]   ;;  %s1191_s1 = inlined_call_operand.hbm [shape: f32[3,3], index: 1, kind: input, shape index: {}]   ;;  %s1192_s2 = inlined_call_operand.hbm [shape: f32[2,3,2,128], index: 2, kind: output, shape index: {}]  }
   0x1   :  { %9 = vsyncpa [#allocation3 + $0x1], 0 }
   0x2   :  { %10 = vsyncpa [#allocation5], 0 }
   0x3   :  { %11 = vsyncpa [#allocation4], 0 }
   0x4   :  { %13 = vsyncpa [#allocation4 + $0x1], 0  ;;  %s833_s9 = smov 0   ;;  %s835_s10 = smov 0  }
   0x5   :  { %s837_s11 = smov 0   ;;  %s839_s12 = smov 0  }
   0x6   :  { %s841_s13 = smov 0   ;;  %s843_s14 = smov 0  }
   0x7 LB: > { %s392_s15 = sadd.s32 4294967295, %s809_s14   ;;  %s393_s16 = sadd.s32 4294967294, %s809_s14   ;;  %s809_s14 = sphi %s843_s14, %s19_s14   ;;  %s805_s13 = sphi %s841_s13, %s1226_s13   ;;  %s801_s12 = sphi %s839_s12, %s1225_s12   ;;  %s797_s11 = sphi %s837_s11, %s1224_s11   ;;  %s793_s10 = sphi %s835_s10, %s1223_s10   ;;  %s789_s9 = sphi %s833_s9, %s1222_s9  }
   0x8   : > { %s40_s17 = sadd.s32 1, %s797_s11  ;;  %p47_p0 = scmp.ne.s32.totalorder %s797_s11, %s793_s10 }
   0x9   : > { %p48_p1 = scmp.eq.s32.totalorder %s809_s14, 0  ;;  %p53_p2 = scmp.ne.s32.totalorder %s793_s10, %s789_s9 }
   0xa   : > { %p871_p3 = scmp.eq.s32.totalorder %s392_s15, 0  ;;  %p100_p4 = scmp.eq.s32.totalorder %s392_s15, 1 }
   0xb   : > { %p49_p5 = por %p48_p1, %p47_p0  ;;  %p106_p6 = scmp.eq.s32.totalorder %s393_s16, 1 }
   0xc   : > { %s1197_s18 = scalar_select %p871_p3, 1, 0 }
   0xd   : > { %p877_p7 = por %p871_p3, %p53_p2  ;;  %p881_p8 = por %p100_p4, %p47_p0 }
   0xe   : > { %p885_p9 = por %p106_p6, %p53_p2  ;;  %p394_p10 = scmp.ge.s32.totalorder %s809_s14, 1 }
   0xf   : > { %s1198_s19 = scalar_select %p877_p7, 1, 0 }
  0x10   : > { %s1199_s20 = scalar_select %p881_p8, 1, 0 }
  0x11   : > { %s1200_s21 = scalar_select %p885_p9, 1, 0 }
  0x12   : > { %p113_p11 = scmp.lt.s32.totalorder %s809_s14, 3  ;;  %p600_p1 = scmp.lt.s32.totalorder %s809_s14, 2 }
  0x13   : > { %s135_s23 = sand.u32 1, %s797_s11   ;;  %s31_s25 = sadd.s32 1, %s805_s13 }
  0x14   : > { %p892_p13 = pnand %p394_p10, %p113_p11  ;;  %p900_p0 = pnand %p600_p1, %p49_p5 }
  0x15   : > { %s419_s26 = smul.u32 6, %s135_s23  ;;  %p33_p4 = scmp.ge.s32.totalorder %s31_s25, 2 }
  0x16   : > { %p587_p7 = pneg %p892_p13  ;;  %s680_s29 = scalar_lea.hbm %s1191_s1, 64 }
  0x17   : > { %p681_p6 = scmp.ne.s32.totalorder %s1191_s1, %s680_s29  ;;  %p687_p5 = scmp.lt.u32.totalorder %s680_s29, %s1191_s1 }
  0x18   : > { %p588_p2 = pnand %p587_p7, %p871_p3 }
  0x1a   : > { %p682_p10 = pneg %p588_p2 }
  0x1c   : > { %p683_p11 = pnand %p682_p10, %p681_p6 }
  0x1e   : > { %p684_p12 = pneg %p683_p11 }
  0x20   : > { %p689_p1 = pnand %p687_p5, %p684_p12 }
  0x22   : > { %692 = shalt.err (!%p689_p1)
}
  0x23   : > { %s811_s6 = smov [#allocation6]   ;;  %s1228_s25 = smov (%p33_p4, %s31_s25), 0 }
  0x24   : > { %590 = dma.hbm_to_smem (!%p588_p2), %s1191_s1, 64, %s811_s6, [#allocation5]  }
  0x25   : > { %s420_s15 = smul.u32 96, %s805_s13  ;;  %s35_s16 = ssub.s32 %s805_s13, %s1228_s25 }
  0x26   : > { %s139_s27 = scalar_lea.vmem [#allocation2], %s419_s26  ;;  %p38_p7 = scmp.eq.s32.totalorder %s35_s16, 0 }
  0x27   : > { %s147_s28 = sshll.u32 %s139_s27, 4  ;;  %s927_s3 = scalar_lea.hbm %s1190_s0, %s420_s15  ;;  %s929_s28 = int_to_ptr.vmem [resolvable:$true] %s147_s28 }
  0x28   : > { %s934_s4 = scalar_select %p38_p7, %s797_s11, %s40_s17  }
  0x29   : > { %s936_s5 = scalar_lea.sflag [#allocation3], %s135_s23  ;;  %s693_s6 = scalar_lea.hbm %s927_s3, 96 }
  0x2a   : > { %p694_p12 = scmp.ne.s32.totalorder %s927_s3, %s693_s6  ;;  %p695_p2 = pneg %p900_p0 }
  0x2b   : > { %s698_s8 = scalar_lea.hbm %s1190_s0, 192  ;;  %p699_p10 = scmp.lt.u32.totalorder %s927_s3, %s1190_s0 }
  0x2c   : > { %p696_p4 = pnand %p695_p2, %p694_p12  ;;  %p700_p11 = scmp.lt.u32.totalorder %s698_s8, %s693_s6 }
  0x2d   : > { %p702_p1 = scmp.lt.u32.totalorder %s693_s6, %s927_s3 }
  0x2e   : > { %p697_p6 = pneg %p696_p4  ;;  %p701_p5 = por %p700_p11, %p699_p10 }
  0x30   : > { %p703_p7 = por %p702_p1, %p701_p5 }
  0x32   : > { %p704_p9 = pnand %p703_p7, %p697_p6 }
  0x34   : > { %707 = shalt.err (!%p704_p9)
}
  0x35   : > { %s708_s17 = scalar_lea.vmem %s929_s28, 96  ;;  %s812_s23 = smov [#allocation2]  }
  0x36   : > { %p709_p12 = scmp.ne.s32.totalorder %s929_s28, %s708_s17  ;;  %s713_s27 = sshll.u32 %s812_s23, 4  ;;  %s714_s27 = int_to_ptr.vmem [resolvable:$false] %s713_s27 }
  0x37   : > { %s715_s29 = scalar_lea.vmem %s714_s27, 192  ;;  %p716_p3 = scmp.lt.s32.totalorder %s929_s28, %s714_s27 }
  0x38   : > { %p711_p4 = pnand %p709_p12, %p695_p2  ;;  %p717_p10 = scmp.lt.s32.totalorder %s715_s29, %s708_s17 }
  0x3a   : > { %p712_p8 = pneg %p711_p4  ;;  %p718_p11 = por %p717_p10, %p716_p3 }
  0x3c   : > { %p719_p5 = pnand %p718_p11, %p712_p8 }
  0x3e   : > { %722 = shalt.err (!%p719_p5)
}
  0x3f   : > { %s813_s30 = smov 32   ;;  %s814_s6 = smov 2  }
  0x40   : > { %594 = dma.hbm_to_vmem [thread:$0]  (!%p900_p0), %s927_s3, 96, %s929_s28, %s936_s5, %s813_s30, %s813_s30, %s814_s6  }
  0x41   : > { %159 = sbr.rel (%p892_p13) target bundleno = 179 (0xb3), region = 28  ;;  %s967_s26 = sand.u32 (!%p892_p13), 1, %s793_s10  }
  0x42   : > { %s421_s7 = smul.u32 (!%p892_p13), 6, %s967_s26  ;;  %s162_s8 = scalar_lea.sflag (!%p892_p13), [#allocation3], %s967_s26 }
  0x43   : > { %p1203_p3 = scmp.ne.s32.totalorder (!%p892_p13), %s1198_s19, 0 }
  0x44   : > { %s165_s15 = scalar_lea.vmem (!%p892_p13), [#allocation2], %s421_s7 }
  0x48   : > { %776 = dma.done.wait (%p1203_p3), %s162_s8, 96  }
  0x49   : > { %778 = vsyncadd (%p1203_p3), %s162_s8, 4294967200  ;;  %p1204_p8 = scmp.ne.s32.totalorder %s1197_s18, 0 }
  0x4b   : > { %780 = dma.done.wait (%p1204_p8), [#allocation5], 64  }
  0x4c   : > { %782 = vsyncadd (%p1204_p8), [#allocation5], 4294967232 }
  0x4d   : > { %174 = sfence }
  0x4e   : > { %v981_v0 = vld [vmem:[%s165_s15] sm:$0x3]  ;;  %v983_v1 = vld [vmem:[%s165_s15 + $0x2] sm:$0x3]  ;;  %v985_v2 = vld [vmem:[%s165_s15 + $0x4] sm:$0x3] }
  0x4f   : > { %v203_v3 = vadd.f32 1.11, %v981_v0  ;;  %v204_v4 = vadd.f32 1.11, %v983_v1  ;;  %v205_v5 = vadd.f32 1.11, %v985_v2 }
  0x50   : > { %v197_v21 = vmul.f32 0.03869969, %v981_v0  ;;  %v198_v22 = vmul.f32 0.03869969, %v983_v1  ;;  %v199_v23 = vmul.f32 0.03869969, %v985_v2 }
  0x51   : > { %v206_v6 = vmax.f32 %v203_v3, 0.0  ;;  %v207_v7 = vmax.f32 %v204_v4, 0.0  ;;  %v208_v8 = vmax.f32 %v205_v5, 0.0  ;;  %s1002_s18 = sld [smem:[#allocation6]]  ;;  %s1004_s19 = sld [smem:[#allocation6 + $0x1]] }
  0x52   : > { %s1006_s22 = sld [smem:[#allocation6 + $0x2]]  ;;  %s1008_s24 = sld [smem:[#allocation6 + $0x80]]  ;;  %vm194_vm0 = vcmp.le.f32.partialorder %v981_v0, -0.9191  ;;  %v200_v24 = vadd.f32 0.03869969, %v197_v21 }
  0x53   : > { %v990_v9 = vmul.f32 0.47393364, %v206_v6  ;;  %v992_v10 = vmul.f32 0.47393364, %v207_v7  ;;  %v994_v11 = vmul.f32 0.47393364, %v208_v8 }
  0x54   : > { %s1011_s28 = sld [smem:[#allocation6 + $0x81]]  ;;  %s1013_s3 = sld [smem:[#allocation6 + $0x82]]  ;;  %v201_v25 = vadd.f32 0.03869969, %v198_v22  ;;  %v202_v26 = vadd.f32 0.03869969, %v199_v23 }
  0x55   : > { %v426_v12 = vand.u32 2147483647, %v990_v9  ;;  %v452_v13 = vand.u32 2147483647, %v992_v10  ;;  %v478_v14 = vand.u32 2147483647, %v994_v11  ;;  %vm443_vm6 = vcmp.ne.f32.partialorder %v990_v9, %v990_v9 }
  0x56   : > { %s1016_s5 = sld [smem:[#allocation6 + $0x100]]  ;;  %vm430_vm2 = vcmp.lt.f32.partialorder %v990_v9, 0  ;;  %vm431_vm3 = vcmp.eq.f32.partialorder %v990_v9, 0  ;;  %s1020_s16 = sld [smem:[#allocation6 + $0x101]]  ;;  %vm432_vm5 = vcmp.eq.f32.partialorder %v990_v9, 1065353216  ;;  %vm456_vm7 = vcmp.lt.f32.partialorder %v992_v10, 0 }
  0x57   : > { %656 = vlog2.f32 %v426_v12  ;;  %vm457_vm8 = vcmp.eq.f32.partialorder %v992_v10, 0  ;;  %s1028_s17 = sld [smem:[#allocation6 + $0x102]]  ;;  %vm1030_vm9 = vcmp.eq.f32.partialorder %v426_v12, 2139095040  ;;  %vm458_vm10 = vcmp.eq.f32.partialorder %v992_v10, 1065353216  ;;  %s578_s23 = smul.u32 96, %s801_s12 }
  0x58   : > { %658 = vlog2.f32 %v452_v13  ;;  %vm1035_vm11 = vcmp.eq.f32.partialorder %v452_v13, 2139095040  ;;  %vm469_vm12 = vcmp.ne.f32.partialorder %v992_v10, %v992_v10  ;;  %vm482_vm13 = vcmp.lt.f32.partialorder %v994_v11, 0  ;;  %s190_s27 = scalar_lea.vmem [#allocation7], %s421_s7  ;;  %s281_s7 = scalar_lea.sflag [#allocation4], %s967_s26 }
  0x59   : > { %660 = vlog2.f32 %v478_v14  ;;  %vm483_vm14 = vcmp.eq.f32.partialorder %v994_v11, 0  ;;  %vm484_vm15 = vcmp.eq.f32.partialorder %v994_v11, 1065353216  ;;  %vm495_vm4 = vcmp.ne.f32.partialorder %v994_v11, %v994_v11  ;;  %s295_s29 = sshll.u32 %s190_s27, 4  ;;  %s1141_s6 = scalar_lea.hbm %s1192_s2, %s578_s23  ;;  %s1136_s29 = int_to_ptr.vmem [resolvable:$true] %s295_s29 }
  0x5a   : > { %vm1048_vm1 = vcmp.eq.f32.partialorder %v478_v14, 2139095040  ;;  %v219_v33 = vstv %s1002_s18  ;;  %v222_v34 = vstv %s1004_s19  ;;  %v226_v37 = vstv %s1006_s22  ;;  %s723_s8 = scalar_lea.vmem %s1136_s29, 96  ;;  %p1219_p13 = scmp.ne.s32.totalorder %s1199_s20, 0 }
  0x5b   : > { %v239_v38 = vstv %s1008_s24  ;;  %v242_v42 = vstv %s1011_s28  ;;  %v246_v43 = vstv %s1013_s3  ;;  %p724_p9 = scmp.ne.s32.totalorder %s1136_s29, %s723_s8  ;;  %s815_s15 = smov [#allocation7]  }
  0x5c   : > { %v260_v47 = vstv %s1016_s5  ;;  %v263_v51 = vstv %s1020_s16  ;;  %s727_s18 = sshll.u32 %s815_s15, 4  ;;  %s728_s18 = int_to_ptr.vmem [resolvable:$false] %s727_s18 }
  0x5d   : > { %v267_v55 = vstv %s1028_s17  ;;  %p725_p0 = pnand %p724_p9, %p1219_p13  ;;  %s729_s19 = scalar_lea.vmem %s728_s18, 192 }
  0x5e   : > { %p730_p6 = scmp.lt.s32.totalorder %s1136_s29, %s728_s18  ;;  %p731_p1 = scmp.lt.s32.totalorder %s729_s19, %s723_s8 }
  0x5f   : > { %p726_p2 = pneg %p725_p0 }
  0x60   : > { %p732_p7 = por %p731_p1, %p730_p6 }
  0x61   : > { %v657_v15 = vpop.eup %656 }
  0x62   : > { %v659_v16 = vpop.eup %658  ;;  %v428_v17 = vmul.f32 2.4, %v657_v15  ;;  %p733_p12 = pnand %p732_p7, %p726_p2 }
  0x63   : > { %v454_v18 = vmul.f32 2.4, %v659_v16  ;;  %v661_v19 = vpop.eup %660 }
  0x64   : > { %662 = vpow2.f32 %v428_v17  ;;  %v480_v20 = vmul.f32 2.4, %v661_v19 }
  0x65   : > { %664 = vpow2.f32 %v454_v18 }
  0x66   : > { %666 = vpow2.f32 %v480_v20 }
  0x6e   : > { %v663_v29 = vpop.eup %662 }
  0x6f   : > { %v665_v30 = vpop.eup %664  ;;  %v436_v31 = vsel %vm430_vm2, 2143289344, %v663_v29  ;;  %vm1211_vm2 = vcmp.le.f32.partialorder %v983_v1, -0.9191 }
  0x70   : > { %v437_v35 = vsel %vm431_vm3, 0, %v436_v31  ;;  %v462_v36 = vsel %vm456_vm7, 2143289344, %v665_v30  ;;  %v667_v39 = vpop.eup %666 }
  0x71   : > { %v442_v40 = vsel %vm1030_vm9, 2139095040, %v437_v35  ;;  %v463_v41 = vsel %vm457_vm8, 0, %v462_v36  ;;  %v488_v46 = vsel %vm482_vm13, 2143289344, %v667_v39 }
  0x72   : > { %v446_v44 = vsel %vm443_vm6, 2143289344, %v442_v40  ;;  %v468_v45 = vsel %vm1035_vm11, 2139095040, %v463_v41  ;;  %v489_v50 = vsel %vm483_vm14, 0, %v488_v46 }
  0x73   : > { %v447_v48 = vsel %vm432_vm5, 1065353216, %v446_v44  ;;  %v472_v49 = vsel %vm469_vm12, 2143289344, %v468_v45  ;;  %v494_v53 = vsel %vm1048_vm1, 2139095040, %v489_v50  ;;  %vm1212_vm1 = vcmp.le.f32.partialorder %v985_v2, -0.9191 }
  0x74   : > { %v473_v52 = vsel %vm458_vm10, 1065353216, %v472_v49  ;;  %v215_v54 = vsel %vm194_vm0, %v200_v24, %v447_v48  ;;  %v498_v56 = vsel %vm495_vm4, 2143289344, %v494_v53 }
  0x75   : > { %v216_v57 = vsel %vm1211_vm2, %v201_v25, %v473_v52  ;;  %v220_v58 = vmul.f32 %v219_v33, %v215_v54  ;;  %v240_v59 = vmul.f32 %v239_v38, %v215_v54  ;;  %v499_v60 = vsel %vm484_vm15, 1065353216, %v498_v56 }
  0x76   : > { %v223_v61 = vmul.f32 %v222_v34, %v216_v57  ;;  %v243_v62 = vmul.f32 %v242_v42, %v216_v57  ;;  %v261_v63 = vmul.f32 %v260_v47, %v215_v54  ;;  %v217_v0 = vsel %vm1212_vm1, %v202_v26, %v499_v60 }
  0x77   : > { %v264_v3 = vmul.f32 %v263_v51, %v216_v57  ;;  %v227_v5 = vmul.f32 %v226_v37, %v217_v0  ;;  %v247_v7 = vmul.f32 %v246_v43, %v217_v0  ;;  %v268_v9 = vmul.f32 %v267_v55, %v217_v0 }
  0x78   : > { %v224_v4 = vadd.f32 %v223_v61, %v220_v58  ;;  %v244_v6 = vadd.f32 %v243_v62, %v240_v59 }
  0x79   : > { %v265_v8 = vadd.f32 %v264_v3, %v261_v63 }
  0x7a   : > { %v1098_v1 = vadd.f32 %v227_v5, %v224_v4  ;;  %v1100_v10 = vadd.f32 %v247_v7, %v244_v6 }
  0x7b   : > { %v1102_v12 = vadd.f32 %v268_v9, %v265_v8 }
  0x7c   : > { %v229_v11 = vmax.f32 %v1098_v1, 0.0  ;;  %v249_v13 = vmax.f32 %v1100_v10, 0.0  ;;  %v232_v23 = vmul.f32 25.84, %v1098_v1  ;;  %v252_v26 = vmul.f32 25.84, %v1100_v10 }
  0x7d   : > { %v270_v2 = vmax.f32 %v1102_v12, 0.0  ;;  %v273_v45 = vmul.f32 25.84, %v1102_v12  ;;  %vm231_vm1 = vcmp.le.f32.partialorder %v1098_v1, 0.0031308 }
  0x7e   : > { %v504_v14 = vand.u32 2147483647, %v229_v11  ;;  %v530_v15 = vand.u32 2147483647, %v249_v13  ;;  %vm508_vm0 = vcmp.lt.f32.partialorder %v229_v11, 0  ;;  %vm509_vm3 = vcmp.eq.f32.partialorder %v229_v11, 0 }
  0x7f   : > { %v556_v16 = vand.u32 2147483647, %v270_v2  ;;  %vm534_vm4 = vcmp.lt.f32.partialorder %v249_v13, 0  ;;  %vm510_vm5 = vcmp.eq.f32.partialorder %v229_v11, 1065353216  ;;  %vm535_vm7 = vcmp.eq.f32.partialorder %v249_v13, 0 }
  0x80   : > { %668 = vlog2.f32 %v504_v14  ;;  %vm1108_vm6 = vcmp.eq.f32.partialorder %v504_v14, 2139095040  ;;  %vm521_vm8 = vcmp.ne.f32.partialorder %v229_v11, %v229_v11  ;;  %v402_v29 = vadd.f32 -1.0, %v232_v23 }
  0x81   : > { %670 = vlog2.f32 %v530_v15  ;;  %vm1113_vm9 = vcmp.eq.f32.partialorder %v530_v15, 2139095040  ;;  %vm547_vm10 = vcmp.ne.f32.partialorder %v249_v13, %v249_v13  ;;  %vm560_vm11 = vcmp.lt.f32.partialorder %v270_v2, 0 }
  0x82   : > { %672 = vlog2.f32 %v556_v16  ;;  %vm536_vm12 = vcmp.eq.f32.partialorder %v249_v13, 1065353216  ;;  %vm561_vm13 = vcmp.eq.f32.partialorder %v270_v2, 0  ;;  %vm562_vm14 = vcmp.eq.f32.partialorder %v270_v2, 1065353216 }
  0x83   : > { %vm1121_vm15 = vcmp.eq.f32.partialorder %v556_v16, 2139095040  ;;  %vm573_vm2 = vcmp.ne.f32.partialorder %v270_v2, %v270_v2  ;;  %v407_v46 = vadd.f32 -1.0, %v252_v26  ;;  %v413_v54 = vadd.f32 -1.0, %v273_v45 }
  0x8a   : > { %v669_v17 = vpop.eup %668 }
  0x8b   : > { %v671_v18 = vpop.eup %670  ;;  %v506_v19 = vmul.f32 0.41666666, %v669_v17 }
  0x8c   : > { %v532_v20 = vmul.f32 0.41666666, %v671_v18  ;;  %v673_v21 = vpop.eup %672 }
  0x8d   : > { %674 = vpow2.f32 %v506_v19  ;;  %v558_v22 = vmul.f32 0.41666666, %v673_v21 }
  0x8e   : > { %676 = vpow2.f32 %v532_v20 }
  0x8f   : > { %678 = vpow2.f32 %v558_v22 }
  0x97   : > { %v675_v24 = vpop.eup %674 }
  0x98   : > { %v677_v27 = vpop.eup %676  ;;  %v514_v28 = vsel %vm508_vm0, 2143289344, %v675_v24  ;;  %vm251_vm0 = vcmp.le.f32.partialorder %v1100_v10, 0.0031308 }
  0x99   : > { %v515_v31 = vsel %vm509_vm3, 0, %v514_v28  ;;  %v540_v32 = vsel %vm534_vm4, 2143289344, %v677_v27  ;;  %v679_v35 = vpop.eup %678  ;;  %vm272_vm3 = vcmp.le.f32.partialorder %v1102_v12, 0.0031308 }
  0x9a   : > { %v520_v33 = vsel %vm1108_vm6, 2139095040, %v515_v31  ;;  %v541_v34 = vsel %vm535_vm7, 0, %v540_v32  ;;  %v566_v41 = vsel %vm560_vm11, 2143289344, %v679_v35 }
  0x9b   : > { %v524_v36 = vsel %vm521_vm8, 2143289344, %v520_v33  ;;  %v546_v37 = vsel %vm1113_vm9, 2139095040, %v541_v34  ;;  %v567_v44 = vsel %vm561_vm13, 0, %v566_v41 }
  0x9c   : > { %v525_v39 = vsel %vm510_vm5, 1065353216, %v524_v36  ;;  %v550_v40 = vsel %vm547_vm10, 2143289344, %v546_v37  ;;  %v572_v48 = vsel %vm1121_vm15, 2139095040, %v567_v44 }
  0x9d   : > { %v234_v42 = vmul.f32 2.11, %v525_v39  ;;  %v551_v43 = vsel %vm536_vm12, 1065353216, %v550_v40  ;;  %v576_v50 = vsel %vm573_vm2, 2143289344, %v572_v48 }
  0x9e   : > { %v254_v47 = vmul.f32 2.11, %v551_v43  ;;  %v577_v52 = vsel %vm562_vm14, 1065353216, %v576_v50 }
  0x9f   : > { %v403_v49 = vadd.f32 -1.11, %v234_v42  ;;  %v275_v55 = vmul.f32 2.11, %v577_v52 }
  0xa0   : > { %v408_v51 = vadd.f32 -1.11, %v254_v47 }
  0xa1   : > { %v236_v53 = vsel %vm231_vm1, %v402_v29, %v403_v49  ;;  %v414_v57 = vadd.f32 -1.11, %v275_v55 }
  0xa2   : > { %237 = vst [vmem:[%s190_s27] sm:$0x3] %v236_v53  ;;  %v256_v56 = vsel %vm251_vm0, %v407_v46, %v408_v51 }
  0xa3   : > { %409 = vst [vmem:[%s190_s27 + $0x2] sm:$0x3] %v256_v56  ;;  %v277_v58 = vsel %vm272_vm3, %v413_v54, %v414_v57 }
  0xa4   : > { %415 = vst [vmem:[%s190_s27 + $0x4] sm:$0x3] %v277_v58 }
  0xa5   : > { %736 = shalt.err (!%p733_p12)
}
  0xa6   : > { %s737_s22 = scalar_lea.hbm %s1141_s6, 96  ;;  %s741_s3 = scalar_lea.hbm %s1192_s2, 192 }
  0xa7   : > { %p738_p4 = scmp.ne.s32.totalorder %s1141_s6, %s737_s22  ;;  %p742_p5 = scmp.lt.u32.totalorder %s1141_s6, %s1192_s2 }
  0xa8   : > { %p743_p3 = scmp.lt.u32.totalorder %s741_s3, %s737_s22  ;;  %p745_p9 = scmp.lt.u32.totalorder %s737_s22, %s1141_s6 }
  0xa9   : > { %p739_p10 = pnand %p738_p4, %p1219_p13 }
  0xaa   : > { %p744_p8 = por %p743_p3, %p742_p5 }
  0xab   : > { %p740_p11 = pneg %p739_p10 }
  0xac   : > { %p746_p0 = por %p745_p9, %p744_p8 }
  0xae   : > { %p747_p2 = pnand %p746_p0, %p740_p11 }
  0xb0   : > { %750 = shalt.err (!%p747_p2)
}
  0xb1   : > { %s816_s17 = smov 32   ;;  %s817_s23 = smov 2  }
  0xb2   : > { %585 = dma.vmem_to_hbm [thread:$0]  (%p1219_p13), %s1136_s29, 96, %s1141_s6, %s281_s7, %s816_s17, %s816_s17, %s817_s23  }
  0xb3 PF: > { %s310_s27 = sand.u32 1, %s789_s9   ;;  %p1220_p6 = scmp.ne.s32.totalorder %s1200_s21, 0 }
  0xb4   : > { %p1221_p1 = scmp.ge.s32.totalorder %s809_s14, 2  ;;  %s311_s12 = scalar_lea.sflag [#allocation4], %s310_s27 }
  0xb6   : > { %p596_p7 = pnand %p1221_p1, %p1220_p6 }
  0xb8   : > { %784 = dma.done.wait (!%p596_p7), %s311_s12, 96  }
  0xb9   : > { %786 = vsyncadd (!%p596_p7), %s311_s12, 4294967200  ;;  %s19_s14 = sadd.s32 1, %s809_s14   ;;  %s1222_s9 = smov %s793_s10 }
  0xba   : > { %p16_p12 = scmp.ge.s32.totalorder %s19_s14, 4   ;;  %s1223_s10 = smov %s797_s11 }
  0xbb   : > { %s1224_s11 = smov %s934_s4  ;;  %s1225_s12 = smov %s805_s13 }
  0xbc   : > { %s1226_s13 = smov %s1228_s25  ;;  %18 = sbr.rel (!%p16_p12) target bundleno = 7 (0x7), region = 80 }
  0xc3   :  { %316 = vsyncpa [#allocation3], 1 }
  0xc4   :  { %318 = vsyncpa [#allocation3 + $0x1], 1 }
  0xc5   :  { %319 = vsyncpa [#allocation4], 1 }
  0xc6   :  { %321 = vsyncpa [#allocation4 + $0x1], 1 }
  0xc7   :  { %322 = vsyncpa [#allocation5], 1 }
  0xc8   :  { %324 = vsyncpa [#allocation5 + $0x1], 1 }

</bundles_post_ra>
